<compile_context>
chip_gen: v7x
topology: tpu7x:2x2x1
jax: 0.10.0
libtpu: 0.0.40
codegen_flags: <defaults>
</compile_context>

<pallas_src>
import math

import jax
import jax.numpy as jnp
from jax.experimental import pallas as pl
from jax.experimental.pallas import tpu as pltpu

EPS = 1e-12
LANES = 128


def _cnormsq_kernel(re_ref, im_ref, out_ref):
    # re_ref / im_ref blocks: (B, tn) f32.  The normalization axis
    # (F.normalize dim=1 == batch B of the complex input) is axis 0 here and is
    # fully contained in the block -> no cross-step accumulation needed, and
    # OOB lanes of a ragged edge block only produce garbage in lanes that are
    # masked on store.
    r = re_ref[...].astype(jnp.float32)
    i = im_ref[...].astype(jnp.float32)
    inv_r = 1.0 / jnp.maximum(jnp.sqrt(jnp.sum(r * r, axis=0, keepdims=True)), EPS)
    inv_i = 1.0 / jnp.maximum(jnp.sqrt(jnp.sum(i * i, axis=0, keepdims=True)), EPS)
    out_ref[0, ...] = (r * inv_r).astype(out_ref.dtype)
    out_ref[1, ...] = (i * inv_i).astype(out_ref.dtype)


def _choose_lane_tile(n_cols, batch):
    """Lane-tile width tn (multiple of 128, or the full extent for tiny N).

    Keeps the double-buffered in+out VMEM footprint under ~24 MiB (safe on
    v5e/v6e's 128 MiB and v7x's 64 MiB per-TC VMEM) and prefers >= 4 grid
    steps (>= 2 per v7x TensorCore, so each core still pipelines) as long as
    each step still moves >= ~512 KiB of combined in+out traffic.
    """
    if n_cols <= LANES:
        return n_cols                                   # full-extent block (tiny N)
    max_full = (n_cols // LANES) * LANES                # largest lane-aligned tile <= N
    b_pad = ((max(batch, 1) + 7) // 8) * 8              # sublane padding of the B axis
    budget = 24 * 1024 * 1024
    bytes_per_col = 2 * (2 + 2) * b_pad * 4             # double-buffered, 2 in + 2 out planes
    cap = max(LANES, (budget // bytes_per_col) // LANES * LANES)
    tn = min(cap, max_full)
    min_cols = max(LANES, ((512 * 1024) // (16 * max(batch, 1))) // LANES * LANES)
    while pl.cdiv(n_cols, tn) < 4 and tn >= 2 * min_cols:
        tn = (tn // 2) // LANES * LANES
    return tn


def _normalize_planes(re, im):
    """re, im: f32 (B, N).  Returns f32 (2, B, N): each plane L2-normalized
    over axis 0 (B), y = v / max(||v||_2, 1e-12)."""
    B, N = re.shape
    tn = _choose_lane_tile(N, B)
    grid = pl.cdiv(N, tn)
    return pl.pallas_call(
        _cnormsq_kernel,
        out_shape=jax.ShapeDtypeStruct((2, B, N), jnp.float32),
        grid=(grid,),
        in_specs=[
            pl.BlockSpec((B, tn), lambda j: (0, j)),
            pl.BlockSpec((B, tn), lambda j: (0, j)),
        ],
        out_specs=pl.BlockSpec((2, B, tn), lambda j: (0, 0, j)),
        compiler_params=pltpu.CompilerParams(
            dimension_semantics=("parallel",),
            vmem_limit_bytes=48 * 1024 * 1024,
            # Let XLA fuse the real()/imag() producers into the pallas operands
            # so the split does not cost a separate HBM pass (kernel is purely
            # bandwidth-bound; this is the big lever on all generations).
            allow_input_fusion=[True, True],
        ),
    )(re, im)


def _normalize_ref(re, im):
    """Pure-jnp reference / small-input fallback (stack along axis 0, normalize dim 1)."""
    stacked = jnp.stack((re, im), axis=0)
    norm = jnp.sqrt(jnp.sum(stacked * stacked, axis=1, keepdims=True))
    return stacked / jnp.maximum(norm, EPS)


def cnormsq(x, normed=True, *, min_pallas_bytes=1 << 20):
    """JAX/Pallas equivalent of CNormSq.forward.

    x: complex array of shape (B, ...).  Returns a real float32 array (2, B, ...).
    """
    # TODO(synk): zero-copy complex64->f32 reinterpretation (torch .real/.imag
    # views) has no JAX equivalent (lax.bitcast_convert_type rejects complex),
    # so the split lives in the wrapper; allow_input_fusion lets XLA fuse it
    # into the pallas operands.  complex128 inputs are reduced to f32 precision.
    re = jnp.real(x).astype(jnp.float32)
    im = jnp.imag(x).astype(jnp.float32)
    if not normed:
        return jnp.stack((re, im), axis=0)              # plain complexor, no kernel
    orig = re.shape                                     # (B, ...)
    B = orig[0]
    N = math.prod(orig[1:])
    if 16 * B * N < min_pallas_bytes:                   # dispatch overhead dominates tiny shapes
        return _normalize_ref(re, im)
    out = _normalize_planes(re.reshape(B, N), im.reshape(B, N))
    return out.reshape((2,) + orig)                     # contiguous reshape: free


if __name__ == "__main__":
    key = jax.random.PRNGKey(0)
    kr, ki = jax.random.split(key)

    # Main check: (B, C, H, W) = (2, 4, 16, 16); N = 1024 (lane aligned).
    B, C, H, W = 2, 4, 16, 16
    xr = jax.random.normal(kr, (B, C, H, W), dtype=jnp.float32)
    xi = jax.random.normal(ki, (B, C, H, W), dtype=jnp.float32)
    x = xr + 1j * xi                                    # complex64, NCHW

    out = jax.block_until_ready(cnormsq(x, normed=True, min_pallas_bytes=0))  # force Pallas path
    ref = _normalize_ref(xr, xi)
    assert out.shape == (2, B, C, H, W)
    assert jnp.allclose(out, ref, atol=1e-5, rtol=1e-5)

    # Ragged check: N = 4*10*10 = 400 (not a multiple of 128) exercises the
    # masked edge block — no jnp.pad / output-slice passes in the wrapper.
    xr2 = jax.random.normal(kr, (2, 4, 10, 10), dtype=jnp.float32)
    xi2 = jax.random.normal(ki, (2, 4, 10, 10), dtype=jnp.float32)
    out2 = jax.block_until_ready(cnormsq(xr2 + 1j * xi2, normed=True, min_pallas_bytes=0))
    assert jnp.allclose(out2, _normalize_ref(xr2, xi2), atol=1e-5, rtol=1e-5)

    print("KERNEL_OK")
</pallas_src>

<mosaic_0001>
module attributes {stable_mosaic.version = 11 : i64} {
  func.func @_cnormsq_kernel(%arg0: i32, %arg1: memref<2x1024xf32, #tpu.memory_space<vmem>>, %arg2: memref<2x1024xf32, #tpu.memory_space<vmem>>, %arg3: memref<2x2x1024xf32, #tpu.memory_space<vmem>>) attributes {dimension_semantics = [#tpu.dimension_semantics<parallel>], iteration_bounds = array<i64: 1>, scalar_prefetch = 0 : i64, scratch_operands = 0 : i64, tpu.core_type = #tpu.core_type<tc>, window_params = [{transform_indices = @transform_0, window_bounds = array<i64: 2, 1024>}, {transform_indices = @transform_1, window_bounds = array<i64: 2, 1024>}, {transform_indices = @transform_2, window_bounds = array<i64: 2, 2, 1024>}]} {
    %c0 = arith.constant 0 : index
    %c0_0 = arith.constant 0 : index
    %0 = vector.load %arg1[%c0, %c0_0] : memref<2x1024xf32, #tpu.memory_space<vmem>>, vector<2x1024xf32>
    %c0_1 = arith.constant 0 : index
    %c0_2 = arith.constant 0 : index
    %1 = vector.load %arg2[%c0_1, %c0_2] : memref<2x1024xf32, #tpu.memory_space<vmem>>, vector<2x1024xf32>
    %2 = arith.mulf %0, %0 : vector<2x1024xf32>
    %cst = arith.constant dense<0.000000e+00> : vector<1024xf32>
    %3 = vector.multi_reduction <add>, %2, %cst [0] : vector<2x1024xf32> to vector<1024xf32>
    %4 = vector.shape_cast %3 : vector<1024xf32> to vector<1x1024xf32>
    %5 = math.sqrt %4 : vector<1x1024xf32>
    %cst_3 = arith.constant 9.99999996E-13 : f32
    %6 = vector.broadcast %cst_3 : f32 to vector<1x1024xf32>
    %7 = arith.maximumf %5, %6 : vector<1x1024xf32>
    %cst_4 = arith.constant 1.000000e+00 : f32
    %8 = vector.broadcast %cst_4 : f32 to vector<1x1024xf32>
    %9 = arith.divf %8, %7 : vector<1x1024xf32>
    %10 = arith.mulf %1, %1 : vector<2x1024xf32>
    %cst_5 = arith.constant dense<0.000000e+00> : vector<1024xf32>
    %11 = vector.multi_reduction <add>, %10, %cst_5 [0] : vector<2x1024xf32> to vector<1024xf32>
    %12 = vector.shape_cast %11 : vector<1024xf32> to vector<1x1024xf32>
    %13 = math.sqrt %12 : vector<1x1024xf32>
    %cst_6 = arith.constant 9.99999996E-13 : f32
    %14 = vector.broadcast %cst_6 : f32 to vector<1x1024xf32>
    %15 = arith.maximumf %13, %14 : vector<1x1024xf32>
    %cst_7 = arith.constant 1.000000e+00 : f32
    %16 = vector.broadcast %cst_7 : f32 to vector<1x1024xf32>
    %17 = arith.divf %16, %15 : vector<1x1024xf32>
    %18 = vector.broadcast %9 : vector<1x1024xf32> to vector<2x1024xf32>
    %19 = arith.mulf %0, %18 : vector<2x1024xf32>
    %c0_8 = arith.constant 0 : index
    %c0_9 = arith.constant 0 : index
    %c0_10 = arith.constant 0 : index
    %20 = vector.load %arg3[%c0_8, %c0_9, %c0_10] : memref<2x2x1024xf32, #tpu.memory_space<vmem>>, vector<1x2x1024xf32>
    %21 = vector.shape_cast %20 : vector<1x2x1024xf32> to vector<2x1024xf32>
    %22 = vector.shape_cast %19 : vector<2x1024xf32> to vector<1x2x1024xf32>
    tpu.vector_store %arg3[%c0_8, %c0_9, %c0_10], %22 {strides = array<i32>} : memref<2x2x1024xf32, #tpu.memory_space<vmem>>, vector<1x2x1024xf32>,
    %23 = vector.broadcast %17 : vector<1x1024xf32> to vector<2x1024xf32>
    %24 = arith.mulf %1, %23 : vector<2x1024xf32>
    %c1 = arith.constant 1 : index
    %c0_11 = arith.constant 0 : index
    %c0_12 = arith.constant 0 : index
    %25 = vector.load %arg3[%c1, %c0_11, %c0_12] : memref<2x2x1024xf32, #tpu.memory_space<vmem>>, vector<1x2x1024xf32>
    %26 = vector.shape_cast %25 : vector<1x2x1024xf32> to vector<2x1024xf32>
    %27 = vector.shape_cast %24 : vector<2x1024xf32> to vector<1x2x1024xf32>
    tpu.vector_store %arg3[%c1, %c0_11, %c0_12], %27 {strides = array<i32>} : memref<2x2x1024xf32, #tpu.memory_space<vmem>>, vector<1x2x1024xf32>,
    return
  }
  func.func @transform_0(%arg0: i32) -> (i32, i32) {
    %c0_i32 = arith.constant 0 : i32
    %c0_i32_0 = arith.constant 0 : i32
    return %c0_i32, %arg0 : i32, i32
  }
  func.func @transform_1(%arg0: i32) -> (i32, i32) {
    %c0_i32 = arith.constant 0 : i32
    %c0_i32_0 = arith.constant 0 : i32
    return %c0_i32, %arg0 : i32, i32
  }
  func.func @transform_2(%arg0: i32) -> (i32, i32, i32) {
    %c0_i32 = arith.constant 0 : i32
    %c0_i32_0 = arith.constant 0 : i32
    %c0_i32_1 = arith.constant 0 : i32
    return %c0_i32, %c0_i32_0, %arg0 : i32, i32, i32
  }
}

</mosaic_0001>

<bundles_post_ra>
// kernel: tpu_custom_call.1
= control target key start
LH: loop header
LB: loop body
LE: loop exit
PB: predicated region body
PF: predicated region fallthrough
CT: control target
= control target key end

     0   :  { %7 = vsyncpa [#allocation3], 0  ;;  %s931_s0 = inlined_call_operand.hbm [shape: f32[2,1024], index: 0, kind: input, shape index: {}]   ;;  %s932_s1 = inlined_call_operand.hbm [shape: f32[2,1024], index: 1, kind: input, shape index: {}]   ;;  %s933_s2 = inlined_call_operand.hbm [shape: f32[2,2,1024], index: 2, kind: output, shape index: {}]  }
   0x1   :  { %8 = vsyncpa [#allocation6], 0 }
   0x2   :  { %9 = vsyncpa [#allocation4], 0  ;;  %s662_s9 = smov [#allocation2]   ;;  %s663_s11 = smov [#allocation5]  }
   0x3   :  { %s16_s10 = sshll.u32 %s662_s9, 4  ;;  %s26_s12 = sshll.u32 %s663_s11, 4  ;;  %s17_s10 = int_to_ptr.vmem [resolvable:$true] %s16_s10  ;;  %s27_s12 = int_to_ptr.vmem [resolvable:$true] %s26_s12 }
   0x4   :  { %s590_s15 = scalar_lea.hbm %s931_s0, 256 }
   0x5   :  { %p591_p0 = scmp.ne.s32.totalorder %s931_s0, %s590_s15  ;;  %p594_p1 = scmp.lt.u32.totalorder %s590_s15, %s931_s0 }
   0x7   :  { %p596_p2 = pnand %p594_p1, %p591_p0 }
   0x9   :  { %599 = shalt.err (!%p596_p2)
}
   0xa   :  { %s600_s20 = scalar_lea.vmem %s17_s10, 256  ;;  %p605_p4 = scmp.lt.s32.totalorder %s17_s10, %s17_s10 }
   0xb   :  { %p601_p3 = scmp.ne.s32.totalorder %s17_s10, %s600_s20  ;;  %p606_p5 = scmp.lt.s32.totalorder %s600_s20, %s600_s20 }
   0xd   :  { %p607_p6 = por %p606_p5, %p605_p4 }
   0xf   :  { %p608_p7 = pnand %p607_p6, %p601_p3 }
  0x11   :  { %611 = shalt.err (!%p608_p7)
}
  0x12   :  { %19 = dma.hbm_to_vmem [thread:$0]  %s931_s0, 256, %s17_s10, [#allocation3]  }
  0x13   :  { %s612_s25 = scalar_lea.hbm %s932_s1, 256 }
  0x14   :  { %p613_p8 = scmp.ne.s32.totalorder %s932_s1, %s612_s25  ;;  %p616_p9 = scmp.lt.u32.totalorder %s612_s25, %s932_s1 }
  0x16   :  { %p618_p10 = pnand %p616_p9, %p613_p8 }
  0x18   :  { %621 = shalt.err (!%p618_p10)
}
  0x19   :  { %s622_s30 = scalar_lea.vmem %s27_s12, 256  ;;  %p627_p12 = scmp.lt.s32.totalorder %s27_s12, %s27_s12 }
  0x1a   :  { %p623_p11 = scmp.ne.s32.totalorder %s27_s12, %s622_s30  ;;  %p628_p13 = scmp.lt.s32.totalorder %s622_s30, %s622_s30 }
  0x1c   :  { %p629_p0 = por %p628_p13, %p627_p12 }
  0x1e   :  { %p630_p1 = pnand %p629_p0, %p623_p11 }
  0x20   :  { %633 = shalt.err (!%p630_p1)
}
  0x21   :  { %29 = dma.hbm_to_vmem [thread:$0]  %s932_s1, 256, %s27_s12, [#allocation6]  }
  0x22   :  { %656 = dma.done.wait [#allocation3], 256  }
  0x23   :  { %657 = vsyncadd [#allocation3], 4294967040 }
  0x24   :  { %658 = dma.done.wait [#allocation6], 256  }
  0x25   :  { %659 = vsyncadd [#allocation6], 4294967040  ;;  %v48_v0 = vlaneseq  ;;  %v664_v1 = vmov 1983009808   ;;  %v709_v6 = vld [vmem:[#allocation2] sm:$0xff]  ;;  %v711_v7 = vld [vmem:[#allocation2 + $0x8] sm:$0xff] }
  0x26   :  { %v46_v2 = vunpack.c.l.s4 %v664_v1  ;;  %v40_v8 = vmul.f32 %v709_v6, %v709_v6  ;;  %v41_v9 = vmul.f32 %v711_v7, %v711_v7  ;;  %vm86_vm0 = vcmask 1041408   ;;  %v719_v14 = vld [vmem:[#allocation5] sm:$0xff]  ;;  %v733_v55 = vld [vmem:[#allocation5 + $0x8] sm:$0xff]  ;;  %s665_s1 = smov [#allocation7]  }
  0x27   :  { %v49_v3 = vshrl.u32 %v48_v0, 7  ;;  %v223_v22 = vmul.f32 %v719_v14, %v719_v14  ;;  %s507_s4 = sshll.u32 %s665_s1, 4  ;;  %s508_s4 = int_to_ptr.vmem [resolvable:$true] %s507_s4 }
  0x28   :  { %v47_v4 = vunpack.c.0.s8 %v46_v2  ;;  %v44_v10 = vcombine.high %v40_v8, %v40_v8  ;;  %v61_v12 = vcombine.high %v41_v9, %v41_v9  ;;  %v739_v2 = vmul.f32 %v733_v55, %v733_v55  ;;  %s634_s5 = scalar_lea.vmem %s508_s4, 512  ;;  %p639_p3 = scmp.lt.s32.totalorder %s508_s4, %s508_s4 }
  0x29   :  { %v227_v1 = vcombine.high %v223_v22, %v223_v22  ;;  %p635_p2 = scmp.ne.s32.totalorder %s508_s4, %s634_s5  ;;  %p640_p4 = scmp.lt.s32.totalorder %s634_s5, %s634_s5 }
  0x2a   :  { %v707_v5 = vsub.s32 %v47_v4, %v49_v3 }
  0x2b   :  { %p641_p5 = por %p640_p4, %p639_p3 }
  0x2c   :  { %v51_v11 = vrot.slane %v40_v8, %v707_v5  ;;  %v68_v13 = vrot.slane %v41_v9, %v707_v5  ;;  %v58_v15 = vrot.slane %v44_v10, %v707_v5  ;;  %v75_v18 = vrot.slane %v61_v12, %v707_v5 }
  0x2d   :  { %p642_p6 = pnand %p641_p5, %p635_p2 }
  0x2e   :  { %v59_v16 = vcombine.high %v51_v11, %v51_v11  ;;  %v87_v17 = vsel %vm86_vm0, %v51_v11, 0.0  ;;  %v76_v20 = vcombine.high %v68_v13, %v68_v13  ;;  %v115_v21 = vsel %vm86_vm0, %v68_v13, 0.0 }
  0x2f   :  { %v88_v19 = vrot.slane %v87_v17, 4  ;;  %v60_v23 = vcombine.high %v58_v15, %v58_v15  ;;  %v101_v25 = vsel %vm86_vm0, %v58_v15, 0.0  ;;  %v77_v26 = vcombine.high %v75_v18, %v75_v18 }
  0x30   :  { %v94_v24 = vsel %vm86_vm0, %v59_v16, 0.0  ;;  %v102_v29 = vrot.slane %v101_v25, 4  ;;  %v116_v30 = vrot.slane %v115_v21, 4  ;;  %v122_v32 = vsel %vm86_vm0, %v76_v20, 0.0 }
  0x31   :  { %v89_v27 = vadd.f32 %v88_v19, %v87_v17  ;;  %v95_v28 = vrot.slane %v94_v24, 4  ;;  %v108_v31 = vsel %vm86_vm0, %v60_v23, 0.0  ;;  %v129_v33 = vsel %vm86_vm0, %v75_v18, 0.0 }
  0x32   :  { %v136_v34 = vsel %vm86_vm0, %v77_v26, 0.0  ;;  %v103_v37 = vadd.f32 %v102_v29, %v101_v25  ;;  %v109_v38 = vrot.slane %v108_v31, 4  ;;  %v117_v39 = vadd.f32 %v116_v30, %v115_v21 }
  0x33   :  { %v90_v35 = vrot.slane %v89_v27, 2  ;;  %v96_v36 = vadd.f32 %v95_v28, %v94_v24  ;;  %v123_v40 = vrot.slane %v122_v32, 4  ;;  %v130_v41 = vrot.slane %v129_v33, 4 }
  0x34   :  { %v137_v42 = vrot.slane %v136_v34, 4  ;;  %v104_v45 = vrot.slane %v103_v37, 2  ;;  %v110_v46 = vadd.f32 %v109_v38, %v108_v31  ;;  %v118_v47 = vrot.slane %v117_v39, 2 }
  0x35   :  { %v91_v43 = vadd.f32 %v90_v35, %v89_v27  ;;  %v97_v44 = vrot.slane %v96_v36, 2  ;;  %v124_v48 = vadd.f32 %v123_v40, %v122_v32  ;;  %v131_v49 = vadd.f32 %v130_v41, %v129_v33 }
  0x36   :  { %v138_v50 = vadd.f32 %v137_v42, %v136_v34  ;;  %v105_v53 = vadd.f32 %v104_v45, %v103_v37  ;;  %v111_v54 = vrot.slane %v110_v46, 2  ;;  %v119_v56 = vadd.f32 %v118_v47, %v117_v39 }
  0x37   :  { %v92_v51 = vrot.slane %v91_v43, 1  ;;  %v98_v52 = vadd.f32 %v97_v44, %v96_v36  ;;  %v125_v57 = vrot.slane %v124_v48, 2  ;;  %v132_v58 = vrot.slane %v131_v49, 2 }
  0x38   :  { %v139_v59 = vrot.slane %v138_v50, 2  ;;  %v106_v62 = vrot.slane %v105_v53, 1  ;;  %v112_v63 = vadd.f32 %v111_v54, %v110_v46  ;;  %v120_v0 = vrot.slane %v119_v56, 1 }
  0x39   :  { %v735_v60 = vadd.f32 %v92_v51, %v91_v43  ;;  %v99_v61 = vrot.slane %v98_v52, 1  ;;  %v126_v9 = vadd.f32 %v125_v57, %v124_v48  ;;  %v133_v10 = vadd.f32 %v132_v58, %v131_v49 }
  0x3a   :  { %v743_v4 = vadd.f32 %v106_v62, %v105_v53  ;;  %v113_v8 = vrot.slane %v112_v63, 1  ;;  %v140_v11 = vadd.f32 %v139_v59, %v138_v50  ;;  %v749_v13 = vadd.f32 %v120_v0, %v119_v56 }
  0x3b   :  { %v741_v3 = vadd.f32 %v99_v61, %v98_v52  ;;  %526 = vrsqrt.f32 %v735_v60  ;;  %v234_v15 = vrot.slane %v223_v22, %v707_v5  ;;  %vm145_vm1 = vcmp.eq.f32.partialorder %v735_v60, inf }
  0x3c   :  { %v746_v12 = vadd.f32 %v113_v8, %v112_v63  ;;  %v755_v16 = vrot.slane %v227_v1, %v707_v5  ;;  %v244_v17 = vcombine.high %v739_v2, %v739_v2  ;;  %vm147_vm2 = vcmp.eq.f32.partialorder %v735_v60, 0.0 }
  0x3d   :  { %528 = vrsqrt.f32 %v741_v3  ;;  %v148_v18 = vand.u32 2147483648, %v735_v60  ;;  %vm152_vm3 = vcmp.eq.f32.partialorder %v741_v3, inf  ;;  %vm154_vm4 = vcmp.eq.f32.partialorder %v741_v3, 0.0 }
  0x3e   :  { %530 = vrsqrt.f32 %v743_v4  ;;  %v127_v19 = vrot.slane %v126_v9, 1  ;;  %v134_v20 = vrot.slane %v133_v10, 1  ;;  %v141_v21 = vrot.slane %v140_v11, 1 }
  0x3f   :  { %532 = vrsqrt.f32 %v746_v12  ;;  %v155_v22 = vand.u32 2147483648, %v741_v3  ;;  %vm159_vm5 = vcmp.eq.f32.partialorder %v743_v4, inf  ;;  %vm161_vm6 = vcmp.eq.f32.partialorder %v743_v4, 0.0 }
  0x40   :  { %534 = vrsqrt.f32 %v749_v13  ;;  %v162_v23 = vand.u32 2147483648, %v743_v4  ;;  %v769_v24 = vadd.f32 %v127_v19, %v126_v9  ;;  %v771_v25 = vadd.f32 %v134_v20, %v133_v10 }
  0x41   :  { %v773_v26 = vadd.f32 %v141_v21, %v140_v11  ;;  %vm166_vm7 = vcmp.eq.f32.partialorder %v746_v12, inf  ;;  %vm168_vm8 = vcmp.eq.f32.partialorder %v746_v12, 0.0  ;;  %v169_v27 = vand.u32 2147483648, %v746_v12 }
  0x42   :  { %v242_v28 = vcombine.high %v234_v15, %v234_v15  ;;  %vm173_vm9 = vcmp.eq.f32.partialorder %v749_v13, inf  ;;  %536 = vrsqrt.f32 %v769_v24  ;;  %v269_v29 = vsel %vm86_vm0, %v234_v15, 0.0 }
  0x43   :  { %v283_v30 = vsel %vm86_vm0, %v755_v16, 0.0  ;;  %vm175_vm10 = vcmp.eq.f32.partialorder %v749_v13, 0.0  ;;  %v176_v32 = vand.u32 2147483648, %v749_v13  ;;  %538 = vrsqrt.f32 %v771_v25 }
  0x44   :  { %v243_v33 = vcombine.high %v755_v16, %v755_v16  ;;  %vm180_vm11 = vcmp.eq.f32.partialorder %v769_v24, inf  ;;  %v183_v35 = vand.u32 2147483648, %v769_v24  ;;  %540 = vrsqrt.f32 %v773_v26 }
  0x45   :  { %v527_v31 = vpop.eup %526  ;;  %vm182_vm12 = vcmp.eq.f32.partialorder %v769_v24, 0.0  ;;  %v190_v37 = vand.u32 2147483648, %v771_v25  ;;  %v270_v38 = vrot.slane %v269_v29, 4  ;;  %v276_v39 = vsel %vm86_vm0, %v242_v28, 0.0 }
  0x46   :  { %v144_v34 = vmul.f32 %v527_v31, %v735_v60  ;;  %v284_v40 = vrot.slane %v283_v30, 4  ;;  %vm189_vm14 = vcmp.eq.f32.partialorder %v771_v25, 0.0  ;;  %vm194_vm15 = vcmp.eq.f32.partialorder %v773_v26, inf }
  0x47   :  { %v529_v36 = vpop.eup %528  ;;  %v197_v44 = vand.u32 2147483648, %v773_v26  ;;  %v277_v45 = vrot.slane %v276_v39, 4  ;;  %vm196_vm13 = vcmp.eq.f32.partialorder %v773_v26, 0.0  ;;  %v271_v49 = vadd.f32 %v270_v38, %v269_v29 }
  0x48   :  { %v531_v41 = vpop.eup %530  ;;  %v146_v42 = vsel %vm145_vm1, %v735_v60, %v144_v34  ;;  %v151_v43 = vmul.f32 %v529_v36, %v741_v3  ;;  %v285_v50 = vadd.f32 %v284_v40, %v283_v30  ;;  %v290_v29 = vsel %vm86_vm0, %v243_v33, 0.0 }
  0x49   :  { %v533_v46 = vpop.eup %532  ;;  %v149_v47 = vsel %vm147_vm2, %v148_v18, %v146_v42  ;;  %v158_v48 = vmul.f32 %v531_v41, %v743_v4  ;;  %v278_v54 = vadd.f32 %v277_v45, %v276_v39  ;;  %v272_v59 = vrot.slane %v271_v49, 2 }
  0x4a   :  { %v153_v51 = vsel %vm152_vm3, %v741_v3, %v151_v43  ;;  %v165_v52 = vmul.f32 %v533_v46, %v746_v12  ;;  %v199_v53 = vmax.f32 %v149_v47, 1e-12  ;;  %v535_v56 = vpop.eup %534  ;;  %v286_v60 = vrot.slane %v285_v50, 2 }
  0x4b   :  { %v156_v57 = vsel %vm154_vm4, %v155_v22, %v153_v51  ;;  %v160_v58 = vsel %vm159_vm5, %v743_v4, %v158_v48  ;;  %v172_v3 = vmul.f32 %v535_v56, %v749_v13  ;;  %v273_v8 = vadd.f32 %v272_v59, %v271_v49 }
  0x4c   :  { %v163_v61 = vsel %vm161_vm6, %v162_v23, %v160_v58  ;;  %v167_v62 = vsel %vm166_vm7, %v746_v12, %v165_v52  ;;  %v200_v63 = vmax.f32 %v156_v57, 1e-12  ;;  %542 = vrcp.f32 %v199_v53  ;;  %v537_v9 = vpop.eup %536 }
  0x4d   :  { %v170_v0 = vsel %vm168_vm8, %v169_v27, %v167_v62  ;;  %v201_v1 = vmax.f32 %v163_v61, 1e-12  ;;  %v279_v11 = vrot.slane %v278_v54, 2  ;;  %v287_v15 = vadd.f32 %v286_v60, %v285_v50  ;;  %v539_v4 = vpop.eup %538 }
  0x4e   :  { %v202_v10 = vmax.f32 %v170_v0, 1e-12  ;;  %544 = vrcp.f32 %v200_v63  ;;  %v174_v16 = vsel %vm173_vm9, %v749_v13, %v172_v3  ;;  %v179_v18 = vmul.f32 %v537_v9, %v769_v24  ;;  %v541_v12 = vpop.eup %540 }
  0x4f   :  { %546 = vrcp.f32 %v201_v1  ;;  %v274_v19 = vrot.slane %v273_v8, 1  ;;  %v177_v20 = vsel %vm175_vm10, %v176_v32, %v174_v16  ;;  %v186_v21 = vmul.f32 %v539_v4, %v771_v25 }
  0x50   :  { %548 = vrcp.f32 %v202_v10  ;;  %v280_v22 = vadd.f32 %v279_v11, %v278_v54  ;;  %v181_v23 = vsel %vm180_vm11, %v769_v24, %v179_v18  ;;  %v193_v27 = vmul.f32 %v541_v12, %v773_v26 }
  0x51   :  { %v203_v28 = vmax.f32 %v177_v20, 1e-12  ;;  %v184_v30 = vsel %vm182_vm12, %v183_v35, %v181_v23  ;;  %vm934_vm1 = vcmp.eq.f32.partialorder %v771_v25, inf  ;;  %v288_v32 = vrot.slane %v287_v15, 1 }
  0x52   :  { %v188_v13 = vsel %vm934_vm1, %v771_v25, %v186_v21  ;;  %v281_v31 = vrot.slane %v280_v22, 1  ;;  %v195_v36 = vsel %vm194_vm15, %v773_v26, %v193_v27  ;;  %v204_v38 = vmax.f32 %v184_v30, 1e-12 }
  0x53   :  { %v191_v34 = vsel %vm189_vm14, %v190_v37, %v188_v13  ;;  %550 = vrcp.f32 %v203_v28  ;;  %v198_v33 = vsel %vm196_vm13, %v197_v44, %v195_v36  ;;  %v848_v35 = vadd.f32 %v274_v19, %v273_v8 }
  0x54   :  { %v205_v24 = vmax.f32 %v191_v34, 1e-12  ;;  %v251_v39 = vrot.slane %v739_v2, %v707_v5  ;;  %v206_v40 = vmax.f32 %v198_v33, 1e-12  ;;  %552 = vrcp.f32 %v204_v38 }
  0x55   :  { %v852_v41 = vadd.f32 %v281_v31, %v280_v22  ;;  %v291_v25 = vrot.slane %v290_v29, 4  ;;  %v854_v42 = vadd.f32 %v288_v32, %v287_v15  ;;  %v258_v26 = vrot.slane %v244_v17, %v707_v5 }
  0x56   :  { %v543_v37 = vpop.eup %542  ;;  %554 = vrcp.f32 %v205_v24  ;;  %v259_v48 = vcombine.high %v251_v39, %v251_v39  ;;  %v297_v51 = vsel %vm86_vm0, %v251_v39, 0.0  ;;  %vm327_vm2 = vcmp.eq.f32.partialorder %v848_v35, inf }
  0x57   :  { %556 = vrcp.f32 %v206_v40  ;;  %v292_v43 = vadd.f32 %v291_v25, %v290_v29  ;;  %v260_v50 = vcombine.high %v258_v26, %v258_v26  ;;  %v311_v2 = vsel %vm86_vm0, %v258_v26, 0.0 }
  0x58   :  { %v545_v44 = vpop.eup %544  ;;  %558 = vrsqrt.f32 %v848_v35  ;;  %v298_v54 = vrot.slane %v297_v51, 4  ;;  %v304_v56 = vsel %vm86_vm0, %v259_v48, 0.0  ;;  %v312_v57 = vrot.slane %v311_v2, 4 }
  0x59   :  { %v547_v45 = vpop.eup %546  ;;  %v413_v46 = vcombine.low %v543_v37, %v545_v44  ;;  %v293_v47 = vrot.slane %v292_v43, 2  ;;  %560 = vrsqrt.f32 %v852_v41  ;;  %v318_v58 = vsel %vm86_vm0, %v260_v50, 0.0 }
  0x5a   :  { %v549_v49 = vpop.eup %548  ;;  %562 = vrsqrt.f32 %v854_v42  ;;  %v299_v62 = vadd.f32 %v298_v54, %v297_v51  ;;  %v305_v63 = vrot.slane %v304_v56, 4  ;;  %vm329_vm3 = vcmp.eq.f32.partialorder %v848_v35, 0.0 }
  0x5b   :  { %v414_v17 = vcombine.low %v547_v45, %v549_v49  ;;  %v421_v52 = vrot.slane %v413_v46, %v707_v5  ;;  %v294_v53 = vadd.f32 %v293_v47, %v292_v43  ;;  %v330_v0 = vand.u32 2147483648, %v848_v35 }
  0x5c   :  { %v313_v1 = vadd.f32 %v312_v57, %v311_v2  ;;  %v319_v3 = vrot.slane %v318_v58, 4  ;;  %v300_v11 = vrot.slane %v299_v62, 2  ;;  %v306_v15 = vadd.f32 %v305_v63, %v304_v56 }
  0x5d   :  { %v551_v59 = vpop.eup %550  ;;  %v428_v60 = vrot.slane %v414_v17, %v707_v5  ;;  %v295_v61 = vrot.slane %v294_v53, 1  ;;  %vm334_vm0 = vcmp.eq.f32.partialorder %v852_v41, inf  ;;  %vm336_vm4 = vcmp.eq.f32.partialorder %v852_v41, 0.0 }
  0x5e   :  { %v553_v8 = vpop.eup %552  ;;  %v314_v18 = vrot.slane %v313_v1, 2  ;;  %v337_v20 = vand.u32 2147483648, %v852_v41  ;;  %v320_v21 = vadd.f32 %v319_v3, %v318_v58  ;;  %vm341_vm5 = vcmp.eq.f32.partialorder %v854_v42, inf }
  0x5f   :  { %v429_v9 = vcombine.low %v421_v52, %v428_v60  ;;  %v872_v10 = vadd.f32 %v295_v61, %v294_v53  ;;  %v430_v16 = vcombine.low %v551_v59, %v553_v8  ;;  %v301_v28 = vadd.f32 %v300_v11, %v299_v62 }
  0x60   :  { %v555_v4 = vpop.eup %554  ;;  %vm343_vm6 = vcmp.eq.f32.partialorder %v854_v42, 0.0  ;;  %v307_v13 = vrot.slane %v306_v15, 2  ;;  %v344_v36 = vand.u32 2147483648, %v854_v42  ;;  %v321_v40 = vrot.slane %v320_v21, 2 }
  0x61   :  { %v557_v19 = vpop.eup %556  ;;  %v449_v12 = vmul.f32 %v429_v9, %v709_v6  ;;  %564 = vrsqrt.f32 %v872_v10  ;;  %v438_v27 = vrot.slane %v430_v16, %v707_v5  ;;  %v315_v6 = vadd.f32 %v314_v18, %v313_v1 }
  0x62   :  { %v559_v22 = vpop.eup %558  ;;  %v431_v23 = vcombine.low %v555_v4, %v557_v19  ;;  %v302_v38 = vrot.slane %v301_v28, 1  ;;  %v308_v39 = vadd.f32 %v307_v13, %v306_v15  ;;  %v322_v2 = vadd.f32 %v321_v40, %v320_v21 }
  0x63   :  { %v561_v29 = vpop.eup %560  ;;  %451 = vst [vmem:[#allocation7] sm:$0xff] %v449_v12  ;;  %v326_v30 = vmul.f32 %v559_v22, %v848_v35  ;;  %v316_v43 = vrot.slane %v315_v6, 1  ;;  %vm348_vm7 = vcmp.eq.f32.partialorder %v872_v10, inf  ;;  %v351_v52 = vand.u32 2147483648, %v872_v10 }
  0x64   :  { %v563_v31 = vpop.eup %562  ;;  %v445_v32 = vrot.slane %v431_v23, %v707_v5  ;;  %v333_v34 = vmul.f32 %v561_v29, %v852_v41  ;;  %v309_v47 = vrot.slane %v308_v39, 1  ;;  %v303_v50 = vadd.f32 %v302_v38, %v301_v28 }
  0x65   :  { %v328_v33 = vsel %vm327_vm2, %v848_v35, %v326_v30  ;;  %v340_v24 = vmul.f32 %v563_v31, %v854_v42  ;;  %v317_v17 = vadd.f32 %v316_v43, %v315_v6  ;;  %v323_v53 = vrot.slane %v322_v2, 1 }
  0x66   :  { %v446_v25 = vcombine.low %v438_v27, %v445_v32  ;;  %v331_v37 = vsel %vm329_vm3, %v330_v0, %v328_v33  ;;  %v335_v26 = vsel %vm334_vm0, %v852_v41, %v333_v34  ;;  %v310_v51 = vadd.f32 %v309_v47, %v308_v39 }
  0x67   :  { %v338_v44 = vsel %vm336_vm4, %v337_v20, %v335_v26  ;;  %v342_v45 = vsel %vm341_vm5, %v854_v42, %v340_v24  ;;  %v381_v46 = vmax.f32 %v331_v37, 1e-12  ;;  %vm350_vm8 = vcmp.eq.f32.partialorder %v872_v10, 0.0 }
  0x68   :  { %v450_v48 = vmul.f32 %v446_v25, %v711_v7  ;;  %v382_v49 = vmax.f32 %v338_v44, 1e-12  ;;  %v345_v35 = vsel %vm343_vm6, %v344_v36, %v342_v45  ;;  %v324_v42 = vadd.f32 %v323_v53, %v322_v2 }
  0x69   :  { %566 = vrcp.f32 %v381_v46  ;;  %v383_v7 = vmax.f32 %v345_v35, 1e-12  ;;  %vm355_vm9 = vcmp.eq.f32.partialorder %v303_v50, inf  ;;  %vm357_vm10 = vcmp.eq.f32.partialorder %v303_v50, 0.0 }
  0x6a   :  { %452 = vst [vmem:[#allocation7 + $0x8] sm:$0xff] %v450_v48  ;;  %568 = vrcp.f32 %v382_v49  ;;  %v358_v62 = vand.u32 2147483648, %v303_v50  ;;  %vm362_vm11 = vcmp.eq.f32.partialorder %v310_v51, inf  ;;  %vm364_vm12 = vcmp.eq.f32.partialorder %v310_v51, 0.0 }
  0x6b   :  { %v565_v41 = vpop.eup %564  ;;  %570 = vrsqrt.f32 %v303_v50  ;;  %v365_v1 = vand.u32 2147483648, %v310_v51  ;;  %vm369_vm13 = vcmp.eq.f32.partialorder %v317_v17, inf  ;;  %vm371_vm14 = vcmp.eq.f32.partialorder %v317_v17, 0.0 }
  0x6c   :  { %v347_v54 = vmul.f32 %v565_v41, %v872_v10  ;;  %572 = vrsqrt.f32 %v310_v51  ;;  %vm376_vm15 = vcmp.eq.f32.partialorder %v324_v42, inf  ;;  %v379_v16 = vand.u32 2147483648, %v324_v42 }
  0x6d   :  { %574 = vrsqrt.f32 %v317_v17  ;;  %vm378_vm1 = vcmp.eq.f32.partialorder %v324_v42, 0.0 }
  0x6e   :  { %v349_v56 = vsel %vm348_vm7, %v872_v10, %v347_v54  ;;  %576 = vrsqrt.f32 %v324_v42  ;;  %v372_v10 = vand.u32 2147483648, %v317_v17 }
  0x6f   :  { %v352_v57 = vsel %vm350_vm8, %v351_v52, %v349_v56  ;;  %578 = vrcp.f32 %v383_v7 }
  0x70   :  { %v384_v58 = vmax.f32 %v352_v57, 1e-12 }
  0x72   :  { %580 = vrcp.f32 %v384_v58 }
  0x73   :  { %v567_v59 = vpop.eup %566 }
  0x74   :  { %v569_v60 = vpop.eup %568 }
  0x75   :  { %v571_v61 = vpop.eup %570  ;;  %v461_v8 = vcombine.low %v567_v59, %v569_v60 }
  0x76   :  { %v573_v63 = vpop.eup %572  ;;  %v354_v0 = vmul.f32 %v571_v61, %v303_v50 }
  0x77   :  { %v575_v3 = vpop.eup %574  ;;  %v361_v9 = vmul.f32 %v573_v63, %v310_v51  ;;  %v469_v28 = vrot.slane %v461_v8, %v707_v5 }
  0x78   :  { %v577_v11 = vpop.eup %576  ;;  %v356_v15 = vsel %vm355_vm9, %v303_v50, %v354_v0  ;;  %v368_v4 = vmul.f32 %v575_v3, %v317_v17 }
  0x79   :  { %v579_v18 = vpop.eup %578  ;;  %v359_v19 = vsel %vm357_vm10, %v358_v62, %v356_v15  ;;  %v363_v12 = vsel %vm362_vm11, %v310_v51, %v361_v9  ;;  %v375_v20 = vmul.f32 %v577_v11, %v324_v42 }
  0x7a   :  { %v366_v21 = vsel %vm364_vm12, %v365_v1, %v363_v12  ;;  %v370_v22 = vsel %vm369_vm13, %v317_v17, %v368_v4  ;;  %v385_v23 = vmax.f32 %v359_v19, 1e-12 }
  0x7b   :  { %v373_v29 = vsel %vm371_vm14, %v372_v10, %v370_v22  ;;  %v377_v30 = vsel %vm376_vm15, %v324_v42, %v375_v20  ;;  %v386_v13 = vmax.f32 %v366_v21, 1e-12 }
  0x7c   :  { %v581_v27 = vpop.eup %580  ;;  %v380_v31 = vsel %vm378_vm1, %v379_v16, %v377_v30  ;;  %v387_v32 = vmax.f32 %v373_v29, 1e-12  ;;  %582 = vrcp.f32 %v385_v23 }
  0x7d   :  { %v462_v6 = vcombine.low %v579_v18, %v581_v27  ;;  %v388_v34 = vmax.f32 %v380_v31, 1e-12  ;;  %584 = vrcp.f32 %v386_v13 }
  0x7e   :  { %586 = vrcp.f32 %v387_v32 }
  0x7f   :  { %v476_v36 = vrot.slane %v462_v6, %v707_v5  ;;  %588 = vrcp.f32 %v388_v34 }
  0x81   :  { %v477_v38 = vcombine.low %v469_v28, %v476_v36 }
  0x83   :  { %v497_v33 = vmul.f32 %v477_v38, %v719_v14 }
  0x85   :  { %500 = vst [vmem:[#allocation7 + $0x10] sm:$0xff] %v497_v33 }
  0x86   :  { %v583_v24 = vpop.eup %582 }
  0x87   :  { %v585_v39 = vpop.eup %584 }
  0x88   :  { %v587_v40 = vpop.eup %586  ;;  %v478_v25 = vcombine.low %v583_v24, %v585_v39 }
  0x89   :  { %v589_v37 = vpop.eup %588 }
  0x8a   :  { %v479_v26 = vcombine.low %v587_v40, %v589_v37  ;;  %v486_v43 = vrot.slane %v478_v25, %v707_v5 }
  0x8c   :  { %v493_v44 = vrot.slane %v479_v26, %v707_v5 }
  0x8e   :  { %v494_v45 = vcombine.low %v486_v43, %v493_v44 }
  0x90   :  { %v498_v46 = vmul.f32 %v494_v45, %v733_v55 }
  0x92   :  { %501 = vst [vmem:[#allocation7 + $0x18] sm:$0xff] %v498_v46 }
  0x93   :  { %645 = shalt.err (!%p642_p6)
}
  0x94   :  { %s646_s8 = scalar_lea.hbm %s933_s2, 512 }
  0x95   :  { %p647_p7 = scmp.ne.s32.totalorder %s933_s2, %s646_s8  ;;  %p650_p8 = scmp.lt.u32.totalorder %s646_s8, %s933_s2 }
  0x97   :  { %p652_p9 = pnand %p650_p8, %p647_p7 }
  0x99   :  { %655 = shalt.err (!%p652_p9)
}
  0x9a   :  { %s666_s13 = smov 256   ;;  %s667_s14 = smov 16  }
  0x9b   :  { %513 = dma.vmem_to_hbm [thread:$0]  %s508_s4, 512, %s933_s2, [#allocation4], %s666_s13, %s666_s13, %s667_s14  }
  0x9c   :  { %660 = dma.done.wait [#allocation4], 512  }
  0x9d   :  { %661 = vsyncadd [#allocation4], 4294966784 }
  0x9e   :  { %517 = vsyncpa [#allocation3], 1 }
  0x9f   :  { %518 = vsyncpa [#allocation6], 1 }
  0xa0   :  { %519 = vsyncpa [#allocation4], 1 }

</bundles_post_ra>
